<compile_context>
chip_gen: v7x
topology: tpu7x:2x2x1
jax: 0.10.0
libtpu: 0.0.40
codegen_flags: <defaults>
</compile_context>

<pallas_src>
import jax
import jax.numpy as jnp
from jax import lax
from jax.experimental import pallas as pl
from jax.experimental.pallas import tpu as pltpu


def _pick_lane_tile(S, max_tn=8192):
    """Largest lane tile (multiple of 128) that divides S; fall back to full S."""
    for tn in (max_tn, 4096, 2048, 1024, 512, 256, 128):
        if tn <= S and S % tn == 0:
            return tn
    return S  # full-extent block (allowed even when S is not a multiple of 128)


def make_focal_loss(num_class, alpha=0.25, gamma=2, balance_index=0,
                    size_average=True, eps=1e-6, lane_tile=8192):
    # Deterministic alpha vector, mirroring FocalLoss_Ori.__init__ for float alpha.
    assert 0 < alpha < 1.0 and balance_index > -1
    alpha_vec = jnp.full((num_class,), 1.0 - alpha, dtype=jnp.float32)
    alpha_vec = alpha_vec.at[balance_index].set(alpha)
    # TODO(synk): list/tuple/tensor alpha (arbitrary per-class weights) would need
    # a per-class alpha input ref; only the float-alpha constructor path is handled.

    use_int_pow = float(gamma) == int(gamma)
    gamma_int = int(gamma)

    def kernel(logit_ref, target_ref, out_ref, acc_ref):
        s = pl.program_id(1)

        @pl.when(s == 0)
        def _():
            acc_ref[...] = jnp.zeros_like(acc_ref)

        logit = logit_ref[...].astype(jnp.float32)             # (C, tn)
        tgt = target_ref[...]                                   # (1, tn) int32

        # One-hot gather of logit[target] along the class (sublane) axis.
        # NOTE: out-of-range targets yield pt = eps (large loss), same silent
        # behavior class as the original gather would hit with bad indices.
        cls = lax.broadcasted_iota(jnp.int32, logit.shape, 0)   # class id per sublane
        onehot = (cls == tgt).astype(jnp.float32)               # (C, tn)
        pt = jnp.sum(logit * onehot, axis=0, keepdims=True) + eps   # (1, tn)

        # alpha gather: the float-alpha path produces a two-valued alpha vector,
        # so a single select on already-loaded target data suffices.
        alpha_class = jnp.where(tgt == balance_index,
                                jnp.float32(alpha), jnp.float32(1.0 - alpha))
        logpt = alpha_class * jnp.log(pt)

        one_minus = 1.0 - pt
        if use_int_pow:
            focal = lax.integer_pow(one_minus, gamma_int)        # pure VPU multiplies
        else:
            focal = one_minus ** gamma
        loss = -focal * logpt                                    # (1, tn)

        acc_ref[...] += loss                                     # lane-wide accumulate

        @pl.when(s == pl.num_programs(1) - 1)
        def _():
            total = jnp.sum(acc_ref[...])                        # one XLU reduce / batch
            out_ref[...] = jnp.full(out_ref.shape, total, dtype=jnp.float32)

    def focal_loss(logit, target):
        B, C = logit.shape[0], logit.shape[1]
        assert C == num_class
        # Native layout: a free reshape only -- NO transpose pass over the data.
        logit_3d = logit.reshape(B, C, -1)                       # [B, C, S]
        S = logit_3d.shape[2]
        target_3d = target.reshape(B, 1, S).astype(jnp.int32)    # [B, 1, S]

        tn = _pick_lane_tile(S, max_tn=lane_tile)                # tn divides S exactly
        grid = (B, S // tn)                                      # no padding, no masking

        partials = pl.pallas_call(
            kernel,
            out_shape=jax.ShapeDtypeStruct((B, 8, 128), jnp.float32),
            grid_spec=pltpu.PrefetchScalarGridSpec(
                num_scalar_prefetch=0,
                grid=grid,
                in_specs=[
                    # logit block: classes on sublanes, spatial on lanes
                    pl.BlockSpec((None, C, tn), lambda b, s: (b, 0, s)),
                    # target block: lane-dense int32 row
                    pl.BlockSpec((None, 1, tn), lambda b, s: (b, 0, s)),
                ],
                # per-batch partial-sum block, resident across the s axis
                out_specs=pl.BlockSpec((None, 8, 128), lambda b, s: (b, 0, 0)),
                scratch_shapes=[pltpu.VMEM((1, tn), jnp.float32)],
            ),
            compiler_params=pltpu.CompilerParams(
                dimension_semantics=("parallel", "arbitrary")),   # megacore over batch
        )(logit_3d, target_3d)

        total = jnp.sum(partials[:, 0, 0])                        # combine B partials
        n_elems = B * S
        if size_average:
            return total / n_elems
        return total

    return focal_loss, alpha_vec


def focal_loss_reference(logit, target, alpha_vec, gamma=2, eps=1e-6,
                         size_average=True):
    B, C = logit.shape[0], logit.shape[1]
    l2 = jnp.transpose(logit.reshape(B, C, -1), (0, 2, 1)).reshape(-1, C)
    t = target.reshape(-1).astype(jnp.int32)
    pt = jnp.take_along_axis(l2, t[:, None], axis=1)[:, 0] + eps
    logpt = alpha_vec[t] * jnp.log(pt)
    loss = -((1.0 - pt) ** gamma) * logpt
    return jnp.mean(loss) if size_average else jnp.sum(loss)


if __name__ == "__main__":
    key = jax.random.PRNGKey(0)
    k1, k2 = jax.random.split(key)

    B, C, H, W = 2, 4, 16, 16          # num_class = 4
    raw = jax.random.normal(k1, (B, C, H, W), dtype=jnp.float32)
    # The module expects probabilities over the class dim (it gathers pt directly).
    logit = jax.nn.softmax(raw, axis=1)
    target = jax.random.randint(k2, (B, H, W), 0, C, dtype=jnp.int32)

    focal_loss, alpha_vec = make_focal_loss(
        num_class=C, alpha=0.25, gamma=2, balance_index=0, size_average=True)

    out = focal_loss(logit, target)
    out = jax.block_until_ready(out)

    ref = focal_loss_reference(logit, target, alpha_vec)
    assert jnp.allclose(out, ref, rtol=1e-5, atol=1e-6), (out, ref)
    print("KERNEL_OK")
</pallas_src>

<mosaic_0001>
module attributes {stable_mosaic.version = 11 : i64} {
  func.func @kernel(%arg0: i32, %arg1: i32, %arg2: memref<1x4x256xf32, #tpu.memory_space<vmem>>, %arg3: memref<1x1x256xi32, #tpu.memory_space<vmem>>, %arg4: memref<1x8x128xf32, #tpu.memory_space<vmem>>, %arg5: memref<1x256xf32, #tpu.memory_space<vmem>>) attributes {dimension_semantics = [#tpu.dimension_semantics<parallel>, #tpu.dimension_semantics<arbitrary>], iteration_bounds = array<i64: 2, 1>, scalar_prefetch = 0 : i64, scratch_operands = 1 : i64, tpu.core_type = #tpu.core_type<tc>, window_params = [{transform_indices = @transform_0, window_bounds = array<i64: 1, 4, 256>}, {transform_indices = @transform_1, window_bounds = array<i64: 1, 1, 256>}, {transform_indices = @transform_2, window_bounds = array<i64: 1, 8, 128>}]} {
    %c0_i32 = arith.constant 0 : i32
    %0 = arith.cmpi eq, %arg1, %c0_i32 : i32
    %1 = arith.extui %0 : i1 to i32
    %c0_i32_0 = arith.constant 0 : i32
    %2 = arith.cmpi ne, %1, %c0_i32_0 : i32
    scf.if %2 {
      %cst_18 = arith.constant 0.000000e+00 : f32
      %36 = vector.broadcast %cst_18 : f32 to vector<1x256xf32>
      %c0_19 = arith.constant 0 : index
      %c0_20 = arith.constant 0 : index
      %37 = vector.load %arg5[%c0_19, %c0_20] : memref<1x256xf32, #tpu.memory_space<vmem>>, vector<1x256xf32>
      tpu.vector_store %arg5[%c0_19, %c0_20], %36 {strides = array<i32>} : memref<1x256xf32, #tpu.memory_space<vmem>>, vector<1x256xf32>,
    } else {
    }
    %c0 = arith.constant 0 : index
    %c0_1 = arith.constant 0 : index
    %c0_2 = arith.constant 0 : index
    %3 = vector.load %arg2[%c0, %c0_1, %c0_2] : memref<1x4x256xf32, #tpu.memory_space<vmem>>, vector<1x4x256xf32>
    %4 = vector.shape_cast %3 : vector<1x4x256xf32> to vector<4x256xf32>
    %c0_3 = arith.constant 0 : index
    %c0_4 = arith.constant 0 : index
    %c0_5 = arith.constant 0 : index
    %5 = vector.load %arg3[%c0_3, %c0_4, %c0_5] : memref<1x1x256xi32, #tpu.memory_space<vmem>>, vector<1x1x256xi32>
    %6 = vector.shape_cast %5 : vector<1x1x256xi32> to vector<1x256xi32>
    %7 = tpu.iota {dimensions = array<i32: 0>} : vector<4x256xi32>
    %8 = vector.broadcast %6 : vector<1x256xi32> to vector<4x256xi32>
    %9 = arith.cmpi eq, %7, %8 : vector<4x256xi32>
    %10 = arith.extui %9 : vector<4x256xi1> to vector<4x256xi32>
    %11 = arith.sitofp %10 : vector<4x256xi32> to vector<4x256xf32>
    %12 = arith.mulf %4, %11 : vector<4x256xf32>
    %cst = arith.constant dense<0.000000e+00> : vector<256xf32>
    %13 = vector.multi_reduction <add>, %12, %cst [0] : vector<4x256xf32> to vector<256xf32>
    %14 = vector.shape_cast %13 : vector<256xf32> to vector<1x256xf32>
    %cst_6 = arith.constant 9.99999997E-7 : f32
    %15 = vector.broadcast %cst_6 : f32 to vector<1x256xf32>
    %16 = arith.addf %14, %15 : vector<1x256xf32>
    %c0_i32_7 = arith.constant 0 : i32
    %17 = vector.broadcast %c0_i32_7 : i32 to vector<1x256xi32>
    %18 = arith.cmpi eq, %6, %17 : vector<1x256xi32>
    %cst_8 = arith.constant 2.500000e-01 : f32
    %cst_9 = arith.constant 7.500000e-01 : f32
    %19 = vector.broadcast %cst_8 : f32 to vector<1x256xf32>
    %20 = vector.broadcast %cst_9 : f32 to vector<1x256xf32>
    %21 = arith.select %18, %19, %20 : vector<1x256xi1>, vector<1x256xf32>
    %22 = math.log %16 : vector<1x256xf32>
    %23 = arith.mulf %21, %22 : vector<1x256xf32>
    %cst_10 = arith.constant 1.000000e+00 : f32
    %24 = vector.broadcast %cst_10 : f32 to vector<1x256xf32>
    %25 = arith.subf %24, %16 : vector<1x256xf32>
    %26 = arith.mulf %25, %25 : vector<1x256xf32>
    %cst_11 = arith.constant 0.000000e+00 : f32
    %27 = vector.broadcast %cst_11 : f32 to vector<1x256xf32>
    %28 = arith.subf %27, %26 : vector<1x256xf32>
    %29 = arith.mulf %28, %23 : vector<1x256xf32>
    %c0_12 = arith.constant 0 : index
    %c0_13 = arith.constant 0 : index
    %30 = vector.load %arg5[%c0_12, %c0_13] : memref<1x256xf32, #tpu.memory_space<vmem>>, vector<1x256xf32>
    %31 = arith.addf %30, %29 : vector<1x256xf32>
    %c0_14 = arith.constant 0 : index
    %c0_15 = arith.constant 0 : index
    %32 = vector.load %arg5[%c0_14, %c0_15] : memref<1x256xf32, #tpu.memory_space<vmem>>, vector<1x256xf32>
    tpu.vector_store %arg5[%c0_14, %c0_15], %31 {strides = array<i32>} : memref<1x256xf32, #tpu.memory_space<vmem>>, vector<1x256xf32>,
    %c0_i32_16 = arith.constant 0 : i32
    %33 = arith.cmpi eq, %arg1, %c0_i32_16 : i32
    %34 = arith.extui %33 : i1 to i32
    %c0_i32_17 = arith.constant 0 : i32
    %35 = arith.cmpi ne, %34, %c0_i32_17 : i32
    scf.if %35 {
      %c0_18 = arith.constant 0 : index
      %c0_19 = arith.constant 0 : index
      %36 = vector.load %arg5[%c0_18, %c0_19] : memref<1x256xf32, #tpu.memory_space<vmem>>, vector<1x256xf32>
      %37 = vector.shape_cast %36 : vector<1x256xf32> to vector<1x1x256xf32>
      %cst_20 = arith.constant dense<0.000000e+00> : vector<1xf32>
      %38 = vector.multi_reduction <add>, %37, %cst_20 [1, 2] : vector<1x1x256xf32> to vector<1xf32>
      %39 = vector.shape_cast %38 : vector<1xf32> to vector<1x1x1xf32>
      %40 = vector.extract %39[0, 0, 0] : f32 from vector<1x1x1xf32>
      %41 = vector.broadcast %40 : f32 to vector<8x128xf32>
      %c0_21 = arith.constant 0 : index
      %c0_22 = arith.constant 0 : index
      %c0_23 = arith.constant 0 : index
      %42 = vector.load %arg4[%c0_21, %c0_22, %c0_23] : memref<1x8x128xf32, #tpu.memory_space<vmem>>, vector<1x8x128xf32>
      %43 = vector.shape_cast %42 : vector<1x8x128xf32> to vector<8x128xf32>
      %44 = vector.shape_cast %41 : vector<8x128xf32> to vector<1x8x128xf32>
      tpu.vector_store %arg4[%c0_21, %c0_22, %c0_23], %44 {strides = array<i32>} : memref<1x8x128xf32, #tpu.memory_space<vmem>>, vector<1x8x128xf32>,
    } else {
    }
    return
  }
  func.func @transform_0(%arg0: i32, %arg1: i32) -> (i32, i32, i32) {
    %c0_i32 = arith.constant 0 : i32
    %c0_i32_0 = arith.constant 0 : i32
    return %arg0, %c0_i32, %arg1 : i32, i32, i32
  }
  func.func @transform_1(%arg0: i32, %arg1: i32) -> (i32, i32, i32) {
    %c0_i32 = arith.constant 0 : i32
    %c0_i32_0 = arith.constant 0 : i32
    return %arg0, %c0_i32, %arg1 : i32, i32, i32
  }
  func.func @transform_2(%arg0: i32, %arg1: i32) -> (i32, i32, i32) {
    %c0_i32 = arith.constant 0 : i32
    %c0_i32_0 = arith.constant 0 : i32
    %c0_i32_1 = arith.constant 0 : i32
    return %arg0, %c0_i32, %c0_i32_0 : i32, i32, i32
  }
}

</mosaic_0001>

<bundles_post_ra>
// kernel: tpu_custom_call.1
= control target key start
LH: loop header
LB: loop body
LE: loop exit
PB: predicated region body
PF: predicated region fallthrough
CT: control target
= control target key end

     0   :  { %7 = vsyncpa [#allocation4], 0  ;;  %s996_s0 = inlined_call_operand.hbm [shape: f32[2,4,256], index: 0, kind: input, shape index: {}]   ;;  %s997_s1 = inlined_call_operand.hbm [shape: s32[2,1,256], index: 1, kind: input, shape index: {}]   ;;  %s998_s2 = inlined_call_operand.hbm [shape: f32[2,8,128], index: 2, kind: output, shape index: {}]  }
   0x1   :  { %9 = vsyncpa [#allocation4 + $0x1], 0 }
   0x2   :  { %10 = vsyncpa [#allocation7], 0 }
   0x3   :  { %12 = vsyncpa [#allocation7 + $0x1], 0 }
   0x4   :  { %13 = vsyncpa [#allocation5], 0 }
   0x5   :  { %15 = vsyncpa [#allocation5 + $0x1], 0  ;;  %s759_s9 = smov 0   ;;  %s761_s10 = smov 0  }
   0x6   :  { %s763_s11 = smov 0   ;;  %s765_s12 = smov 0  }
   0x7   :  { %s767_s13 = smov 0   ;;  %s769_s14 = smov 0  }
   0x8 LB: > { %s492_s15 = sadd.s32 4294967295, %s736_s14   ;;  %s493_s16 = sadd.s32 4294967294, %s736_s14   ;;  %s736_s14 = sphi %s769_s14, %s21_s14   ;;  %s732_s13 = sphi %s767_s13, %s1020_s13   ;;  %s728_s12 = sphi %s765_s12, %s1019_s12   ;;  %s724_s11 = sphi %s763_s11, %s1018_s11   ;;  %s720_s10 = sphi %s761_s10, %s1017_s10   ;;  %s716_s9 = sphi %s759_s9, %s1016_s9  }
   0x9   : > { %s33_s17 = sadd.s32 1, %s732_s13  ;;  %s42_s18 = sadd.s32 1, %s724_s11 }
   0xa   : > { %p35_p0 = scmp.ge.s32.totalorder %s33_s17, 2  ;;  %p49_p1 = scmp.ne.s32.totalorder %s724_s11, %s720_s10 }
   0xb   : > { %p50_p2 = scmp.eq.s32.totalorder %s736_s14, 0  ;;  %p55_p3 = scmp.ne.s32.totalorder %s720_s10, %s716_s9 }
   0xc   : > { %s1022_s17 = smov (%p35_p0, %s33_s17), 0  ;;  %p56_p5 = scmp.eq.s32.totalorder %s492_s15, 0 }
   0xd   : > { %p800_p4 = por %p50_p2, %p49_p1  ;;  %s37_s20 = ssub.s32 %s732_s13, %s1022_s17 }
   0xe   : > { %p107_p6 = scmp.eq.s32.totalorder %s492_s15, 1  ;;  %p40_p7 = scmp.eq.s32.totalorder %s37_s20, 0 }
   0xf   : > { %p806_p8 = por %p56_p5, %p55_p3  ;;  %p113_p10 = scmp.eq.s32.totalorder %s493_s16, 1 }
  0x10   : > { %p810_p9 = por %p107_p6, %p49_p1  ;;  %p533_p13 = scmp.lt.s32.totalorder %s736_s14, 2 }
  0x11   : > { %s1002_s21 = scalar_select %p806_p8, 1, 0 }
  0x12   : > { %s1003_s22 = scalar_select %p810_p9, 1, 0 }
  0x13   : > { %s815_s23 = scalar_select %p40_p7, %s724_s11, %s42_s18  }
  0x14   : > { %p817_p11 = por %p113_p10, %p55_p3  ;;  %s824_s25 = sand.u32 1, %s724_s11  }
  0x15   : > { %s496_s26 = sshll.u32 %s824_s25, 3  ;;  %s512_s27 = sshll.u32 %s732_s13, 7 }
  0x16   : > { %s1004_s24 = scalar_select %p817_p11, 1, 0 }
  0x17   : > { %s831_s30 = scalar_lea.hbm %s996_s0, %s512_s27  ;;  %s137_s3 = scalar_lea.vmem [#allocation3], %s496_s26 }
  0x18   : > { %s147_s4 = sshll.u32 %s137_s3, 4  ;;  %p837_p0 = pnand %p533_p13, %p800_p4  ;;  %s833_s4 = int_to_ptr.vmem [resolvable:$true] %s147_s4 }
  0x19   : > { %s134_s6 = scalar_lea.sflag [#allocation4], %s824_s25  ;;  %s590_s7 = scalar_lea.hbm %s831_s30, 128 }
  0x1a   : > { %p591_p3 = scmp.ne.s32.totalorder %s831_s30, %s590_s7  ;;  %p592_p5 = pneg %p837_p0 }
  0x1b   : > { %s595_s16 = scalar_lea.hbm %s996_s0, 256  ;;  %p596_p4 = scmp.lt.u32.totalorder %s831_s30, %s996_s0 }
  0x1c   : > { %p593_p6 = pnand %p592_p5, %p591_p3  ;;  %p597_p10 = scmp.lt.u32.totalorder %s595_s16, %s590_s7 }
  0x1d   : > { %p599_p12 = scmp.lt.u32.totalorder %s590_s7, %s831_s30 }
  0x1e   : > { %p594_p7 = pneg %p593_p6  ;;  %p598_p13 = por %p597_p10, %p596_p4 }
  0x20   : > { %p600_p1 = por %p599_p12, %p598_p13 }
  0x22   : > { %p601_p2 = pnand %p600_p1, %p594_p7 }
  0x24   : > { %604 = shalt.err (!%p601_p2)
}
  0x25   : > { %s605_s20 = scalar_lea.vmem %s833_s4, 128  ;;  %s738_s26 = smov [#allocation3]  }
  0x26   : > { %p606_p3 = scmp.ne.s32.totalorder %s833_s4, %s605_s20  ;;  %s610_s27 = sshll.u32 %s738_s26, 4  ;;  %s611_s27 = int_to_ptr.vmem [resolvable:$false] %s610_s27 }
  0x27   : > { %s612_s28 = scalar_lea.vmem %s611_s27, 256  ;;  %p613_p9 = scmp.lt.s32.totalorder %s833_s4, %s611_s27 }
  0x28   : > { %p608_p6 = pnand %p606_p3, %p592_p5  ;;  %p614_p4 = scmp.lt.s32.totalorder %s612_s28, %s605_s20 }
  0x2a   : > { %p609_p11 = pneg %p608_p6  ;;  %p615_p10 = por %p614_p4, %p613_p9 }
  0x2c   : > { %p616_p12 = pnand %p615_p10, %p609_p11 }
  0x2e   : > { %619 = shalt.err (!%p616_p12)
}
  0x2f   : > { %525 = dma.hbm_to_vmem [thread:$0]  (!%p837_p0), %s831_s30, 128, %s833_s4, %s134_s6  }
  0x30   : > { %p1006_p1 = scmp.lt.s32.totalorder %s736_s14, 3  ;;  %p1007_p2 = scmp.ge.s32.totalorder %s736_s14, 1 }
  0x31   : > { %s499_s3 = sshll.u32 %s824_s25, 1  ;;  %s513_s7 = sshll.u32 %s732_s13, 5 }
  0x32   : > { %p873_p7 = pnand %p1007_p2, %p1006_p1  ;;  %s882_s16 = scalar_lea.hbm %s997_s1, %s513_s7 }
  0x33   : > { %s158_s18 = scalar_lea.vmem [#allocation6], %s499_s3  ;;  %s155_s30 = scalar_lea.sflag [#allocation7], %s824_s25 }
  0x34   : > { %s1008_s29 = scalar_select %p873_p7, 1, 0 }
  0x35   : > { %s168_s19 = sshll.u32 %s158_s18, 4  ;;  %s620_s4 = scalar_lea.hbm %s882_s16, 32  ;;  %s169_s19 = int_to_ptr.vmem [resolvable:$true] %s168_s19 }
  0x36   : > { %p621_p9 = scmp.ne.s32.totalorder %s882_s16, %s620_s4  ;;  %s625_s26 = scalar_lea.hbm %s997_s1, 64 }
  0x37   : > { %p626_p3 = scmp.lt.u32.totalorder %s882_s16, %s997_s1  ;;  %p627_p6 = scmp.lt.u32.totalorder %s625_s26, %s620_s4 }
  0x38   : > { %p623_p11 = pnand %p621_p9, %p592_p5  ;;  %p629_p10 = scmp.lt.u32.totalorder %s620_s4, %s882_s16 }
  0x39   : > { %p628_p4 = por %p627_p6, %p626_p3 }
  0x3a   : > { %p624_p13 = pneg %p623_p11 }
  0x3b   : > { %p630_p12 = por %p629_p10, %p628_p4 }
  0x3d   : > { %p631_p1 = pnand %p630_p12, %p624_p13 }
  0x3f   : > { %634 = shalt.err (!%p631_p1)
}
  0x40   : > { %s635_s25 = scalar_lea.vmem %s169_s19, 32  ;;  %s739_s3 = smov [#allocation6]  }
  0x41   : > { %p636_p2 = scmp.ne.s32.totalorder %s169_s19, %s635_s25  ;;  %s640_s7 = sshll.u32 %s739_s3, 4  ;;  %s641_s7 = int_to_ptr.vmem [resolvable:$false] %s640_s7 }
  0x42   : > { %s642_s8 = scalar_lea.vmem %s641_s7, 64  ;;  %p643_p8 = scmp.lt.s32.totalorder %s169_s19, %s641_s7 }
  0x43   : > { %p638_p9 = pnand %p636_p2, %p592_p5  ;;  %p644_p7 = scmp.lt.s32.totalorder %s642_s8, %s635_s25 }
  0x45   : > { %p639_p11 = pneg %p638_p9  ;;  %p645_p3 = por %p644_p7, %p643_p8 }
  0x47   : > { %p646_p6 = pnand %p645_p3, %p639_p11 }
  0x49   : > { %649 = shalt.err (!%p646_p6)
}
  0x4a   : > { %528 = dma.hbm_to_vmem [thread:$0]  (!%p837_p0), %s882_s16, 32, %s169_s19, %s155_s30  }
  0x4b   : > { %p1009_p13 = scmp.ne.s32.totalorder %s1008_s29, 0 }
  0x4c   : > { %s907_s15 = sand.u32 (!%p1009_p13), 1, %s720_s10   ;;  %p1010_p8 = scmp.ne.s32.totalorder (!%p1009_p13), %s1002_s21, 0 }
  0x4d   : > { %177 = sbr.rel (%p1009_p13) target bundleno = 384 (0x180), region = 28  ;;  %s503_s18 = sshll.u32 (!%p1009_p13), %s907_s15, 3 }
  0x4e   : > { %s180_s4 = scalar_lea.sflag (!%p1009_p13), [#allocation4], %s907_s15  ;;  %s183_s6 = scalar_lea.vmem (!%p1009_p13), [#allocation3], %s503_s18 }
  0x54   : > { %703 = dma.done.wait (%p1010_p8), %s180_s4, 128  }
  0x55   : > { %705 = vsyncadd (%p1010_p8), %s180_s4, 4294967168  ;;  %s504_s5 = sshll.u32 %s907_s15, 1  ;;  %s189_s29 = scalar_lea.sflag [#allocation7], %s907_s15 }
  0x56   : > { %s192_s16 = scalar_lea.vmem [#allocation6], %s504_s5 }
  0x57   : > { %707 = dma.done.wait (%p1010_p8), %s189_s29, 32  }
  0x58   : > { %709 = vsyncadd (%p1010_p8), %s189_s29, 4294967264  ;;  %v224_v0 = vlaneseq  ;;  %v740_v3 = vmov 0.0   ;;  %v230_v6 = vld [vmem:[%s192_s16] sm:$0x3]  ;;  %v229_v9 = vld [vmem:[%s183_s6] sm:$0xff]  ;;  %vm255_vm3 = vcmask 1043456  }
  0x59   : > { %v741_v31 = vmov 1966171168   ;;  %vm272_vm4 = vcmp.eq.s32.totalorder %v230_v6, 0  ;;  %v742_v45 = vmov 0.75   ;;  %vm356_vm5 = vcmask 1040384   ;;  %s217_s21 = scalar_lea.vmem [#allocation8], %s503_s18 }
  0x5a   : > { %vm923_vm0 = vcmp.lt.s32.totalorder %v224_v0, 256  ;;  %v232_v2 = vshrl.u32 %v224_v0, 7  ;;  %v282_v32 = vunpack.c.l.s4 %v741_v31  ;;  %v273_v46 = vsel %vm272_vm4, 0.25, %v742_v45  ;;  %s385_s19 = sshll.u32 %s217_s21, 4  ;;  %s509_s30 = sshll.u32 %s728_s12, 7  ;;  %s944_s19 = int_to_ptr.vmem [resolvable:$true] %s385_s19 }
  0x5b   : > { %228 = vst.msk [vmem:[#allocation2] sm:$0x3] %vm923_vm0, %v740_v3  ;;  %s949_s28 = scalar_lea.hbm %s998_s2, %s509_s30  ;;  %s372_s25 = scalar_lea.sflag [#allocation5], %s907_s15 }
  0x5c   : > { %v929_v4 = vsub.s32 0, %v232_v2  ;;  %v931_v5 = vsub.s32 1, %v232_v2  ;;  %v283_v33 = vunpack.c.0.s8 %v282_v32  ;;  %s650_s3 = scalar_lea.vmem %s944_s19, 128  ;;  %p1013_p5 = scmp.ne.s32.totalorder %s1003_s22, 0 }
  0x5d   : > { %p651_p0 = scmp.ne.s32.totalorder %s944_s19, %s650_s3  ;;  %s743_s12 = smov [#allocation8]  }
  0x5e   : > { %v236_v7 = vrot.slane %v230_v6, %v929_v4  ;;  %v240_v8 = vrot.slane %v230_v6, %v931_v5  ;;  %v286_v38 = vsub.s32 %v283_v33, %v232_v2  ;;  %s654_s7 = sshll.u32 %s743_s12, 4  ;;  %s655_s7 = int_to_ptr.vmem [resolvable:$false] %s654_s7 }
  0x5f   : > { %p652_p7 = pnand %p651_p0, %p1013_p5  ;;  %s656_s8 = scalar_lea.vmem %s655_s7, 256 }
  0x60   : > { %vm241_vm1 = vcmp.eq.s32.totalorder %v232_v2, %v236_v7  ;;  %vm242_vm2 = vcmp.eq.s32.totalorder %v232_v2, %v240_v8  ;;  %p657_p10 = scmp.lt.s32.totalorder %s944_s19, %s655_s7  ;;  %p658_p12 = scmp.lt.s32.totalorder %s656_s8, %s650_s3 }
  0x61   : > { %v506_v10 = vsel %vm241_vm1, 1.0, %v740_v3  ;;  %v507_v11 = vsel %vm242_vm2, 1.0, %v740_v3  ;;  %p653_p4 = pneg %p652_p7 }
  0x62   : > { %v249_v12 = vcombine.low %v506_v10, %v507_v11  ;;  %v316_v57 = vld [vmem:[#allocation2] sm:$0x3]  ;;  %p659_p1 = por %p658_p12, %p657_p10 }
  0x64   : > { %v251_v13 = vmul.f32 %v249_v12, %v229_v9  ;;  %p660_p2 = pnand %p659_p1, %p653_p4 }
  0x66   : > { %v253_v14 = vcombine.high %v251_v13, %v251_v13  ;;  %v256_v15 = vsel %vm255_vm3, %v251_v13, 0.0 }
  0x67   : > { %v257_v16 = vrot.slane %v256_v15, 4 }
  0x68   : > { %v263_v17 = vsel %vm255_vm3, %v253_v14, 0.0 }
  0x69   : > { %v258_v18 = vadd.f32 %v257_v16, %v256_v15  ;;  %v264_v19 = vrot.slane %v263_v17, 4 }
  0x6b   : > { %v259_v20 = vrot.slane %v258_v18, 2  ;;  %v265_v21 = vadd.f32 %v264_v19, %v263_v17 }
  0x6d   : > { %v260_v22 = vadd.f32 %v259_v20, %v258_v18  ;;  %v266_v23 = vrot.slane %v265_v21, 2 }
  0x6f   : > { %v261_v24 = vrot.slane %v260_v22, 1  ;;  %v267_v25 = vadd.f32 %v266_v23, %v265_v21 }
  0x71   : > { %v262_v26 = vadd.f32 %v261_v24, %v260_v22  ;;  %v268_v27 = vrot.slane %v267_v25, 1 }
  0x73   : > { %v269_v28 = vadd.f32 %v268_v27, %v267_v25  ;;  %v270_v29 = vadd.f32 1e-06, %v262_v26 }
  0x75   : > { %v271_v30 = vadd.f32 1e-06, %v269_v28  ;;  %586 = vlog2.f32 %v270_v29  ;;  %v297_v39 = vsub.f32 1.0, %v270_v29 }
  0x77   : > { %588 = vlog2.f32 %v271_v30  ;;  %v298_v40 = vsub.f32 1.0, %v271_v30  ;;  %v299_v43 = vmul.f32 %v297_v39, %v297_v39 }
  0x79   : > { %v300_v44 = vmul.f32 %v298_v40, %v298_v40  ;;  %v301_v49 = vsub.f32 0.0, %v299_v43 }
  0x7b   : > { %v302_v50 = vsub.f32 0.0, %v300_v44 }
  0x7f   : > { %v587_v34 = vpop.eup %586 }
  0x80   : > { %v275_v35 = vmul.f32 0.6931472, %v587_v34 }
  0x81   : > { %v589_v36 = vpop.eup %588 }
  0x82   : > { %v277_v37 = vmul.f32 0.6931472, %v589_v36 }
  0x84   : > { %v280_v41 = vcombine.low %v275_v35, %v277_v37 }
  0x86   : > { %v287_v42 = vrot.slane %v280_v41, %v286_v38 }
  0x88   : > { %v294_v47 = vrot.slane %v287_v42, %v286_v38 }
  0x8a   : > { %v296_v48 = vmul.f32 %v294_v47, %v273_v46 }
  0x8c   : > { %v307_v51 = vrot.slane %v296_v48, %v929_v4  ;;  %v311_v52 = vrot.slane %v296_v48, %v931_v5 }
  0x8e   : > { %v314_v53 = vmul.f32 %v307_v51, %v301_v49  ;;  %v315_v54 = vmul.f32 %v311_v52, %v302_v50 }
  0x90   : > { %v319_v55 = vcombine.low %v314_v53, %v315_v54 }
  0x92   : > { %v326_v56 = vrot.slane %v319_v55, %v286_v38 }
  0x94   : > { %v333_v58 = vrot.slane %v326_v56, %v286_v38 }
  0x96   : > { %v335_v59 = vadd.f32 %v333_v58, %v316_v57 }
  0x98   : > { %340 = vst.msk [vmem:[#allocation2] sm:$0x3] %vm923_vm0, %v335_v59 }
  0x9f   : > { %v344_v60 = vld [vmem:[#allocation2] sm:$0x3] }
  0xa0   : > { %v349_v61 = vrot.slane %v344_v60, %v929_v4  ;;  %v353_v62 = vrot.slane %v344_v60, %v931_v5 }
  0xa2   : > { %v357_v63 = vsel %vm356_vm5, %v349_v61, 0.0  ;;  %v358_v0 = vsel %vm356_vm5, %v353_v62, 0.0 }
  0xa3   : > { %v359_v2 = vadd.f32 %v358_v0, %v357_v63 }
  0xa5   : > { %360 = vadd.xlane.f32.xlu0 %v359_v2 }
 0x132   : > { %v361_v3 = vpop.xlane.xlu0 %360 }
 0x133   : > { %v362_v6 = vrot.slane %v361_v3, 4 }
 0x135   : > { %v363_v7 = vadd.f32 %v362_v6, %v361_v3 }
 0x137   : > { %v364_v8 = vrot.slane %v363_v7, 2 }
 0x139   : > { %v365_v1 = vadd.f32 %v364_v8, %v363_v7 }
 0x13b   : > { %v366_v9 = vrot.slane %v365_v1, 1 }
 0x13d   : > { %v367_v10 = vadd.f32 %v366_v9, %v365_v1 }
 0x13f   : > { %514 = vpush %v367_v10 }
 0x170   : > { %s515_s20 = spop %514 }
 0x171   : > { %v369_v4 = vstv %s515_s20 }
 0x172   : > { %370 = vst [vmem:[%s217_s21] sm:$0xff] %v369_v4 }
 0x173   : > { %663 = shalt.err (!%p660_p2)
}
 0x174   : > { %s664_s15 = scalar_lea.hbm %s949_s28, 128  ;;  %s668_s6 = scalar_lea.hbm %s998_s2, 256 }
 0x175   : > { %p665_p9 = scmp.ne.s32.totalorder %s949_s28, %s664_s15  ;;  %p669_p6 = scmp.lt.u32.totalorder %s949_s28, %s998_s2 }
 0x176   : > { %p670_p13 = scmp.lt.u32.totalorder %s668_s6, %s664_s15  ;;  %p672_p0 = scmp.lt.u32.totalorder %s664_s15, %s949_s28 }
 0x177   : > { %p666_p11 = pnand %p665_p9, %p1013_p5 }
 0x178   : > { %p671_p8 = por %p670_p13, %p669_p6 }
 0x179   : > { %p667_p3 = pneg %p666_p11 }
 0x17a   : > { %p673_p7 = por %p672_p0, %p671_p8 }
 0x17c   : > { %p674_p4 = pnand %p673_p7, %p667_p3 }
 0x17e   : > { %677 = shalt.err (!%p674_p4)
}
 0x17f   : > { %520 = dma.vmem_to_hbm [thread:$0]  (%p1013_p5), %s944_s19, 128, %s949_s28, %s372_s25  }
 0x180 PF: > { %s397_s16 = sand.u32 1, %s716_s9   ;;  %p1014_p10 = scmp.ne.s32.totalorder %s1004_s24, 0 }
 0x181   : > { %p1015_p12 = scmp.ge.s32.totalorder %s736_s14, 2  ;;  %s398_s21 = scalar_lea.sflag [#allocation5], %s397_s16 }
 0x183   : > { %p530_p1 = pnand %p1015_p12, %p1014_p10 }
 0x185   : > { %711 = dma.done.wait (!%p530_p1), %s398_s21, 128  }
 0x186   : > { %713 = vsyncadd (!%p530_p1), %s398_s21, 4294967168  ;;  %s21_s14 = sadd.s32 1, %s736_s14   ;;  %s1016_s9 = smov %s720_s10 }
 0x187   : > { %p18_p2 = scmp.ge.s32.totalorder %s21_s14, 4   ;;  %s1017_s10 = smov %s724_s11 }
 0x188   : > { %s1018_s11 = smov %s815_s23  ;;  %s1019_s12 = smov %s732_s13 }
 0x189   : > { %s1020_s13 = smov %s1022_s17  ;;  %20 = sbr.rel (!%p18_p2) target bundleno = 8 (0x8), region = 94 }
 0x190   :  { %403 = vsyncpa [#allocation4], 1 }
 0x191   :  { %405 = vsyncpa [#allocation4 + $0x1], 1 }
 0x192   :  { %406 = vsyncpa [#allocation7], 1 }
 0x193   :  { %408 = vsyncpa [#allocation7 + $0x1], 1 }
 0x194   :  { %409 = vsyncpa [#allocation5], 1 }
 0x195   :  { %411 = vsyncpa [#allocation5 + $0x1], 1 }

</bundles_post_ra>
